<compile_context>
chip_gen: v7x
topology: tpu7x:2x2x1
jax: 0.10.0
libtpu: 0.0.40
codegen_flags: <defaults>
</compile_context>

<pallas_src>
import jax
import jax.numpy as jnp
from jax.experimental import pallas as pl
from jax.experimental.pallas import tpu as pltpu


def pooling_kernel(emb_ref, mask_ref, out_ref, msum_ref):
    # emb_ref:  [tB, tS, H]   native dtype (f32 / bf16)
    # mask_ref: [tB, 1,  tS]  float32, lane-dense along S
    # out_ref:  [tB, 1,  H]   float32 -- revisited (resident) across the S axis
    # msum_ref: [tB, 1,  1]   float32 scratch: running sum of the mask
    s = pl.program_id(1)

    @pl.when(s == 0)
    def _init():
        out_ref[...] = jnp.zeros_like(out_ref)
        msum_ref[...] = jnp.zeros_like(msum_ref)

    mask = mask_ref[...]                                   # (tB, 1, tS) f32
    emb = emb_ref[...]                                     # (tB, tS, H) native

    # Batched MXU contraction over the sequence axis:
    #   (tB, 1, tS) @ (tB, tS, H) -> (tB, 1, H), accumulated in f32.
    out_ref[...] += jax.lax.dot_general(
        mask.astype(emb.dtype), emb,
        dimension_numbers=(((2,), (1,)), ((0,), (0,))),
        preferred_element_type=jnp.float32)

    msum_ref[...] += jnp.sum(mask, axis=2, keepdims=True)  # (tB, 1, 1)

    @pl.when(s == pl.num_programs(1) - 1)
    def _finalize():
        # torch.clamp(sum_mask, min=-1e-09) == max(sum_mask, -1e-9)
        denom = jnp.maximum(msum_ref[...], jnp.float32(-1e-9))
        out_ref[...] = out_ref[...] * pl.reciprocal(denom, approx=False)


def _pick_block(dim, target, multiple):
    """Largest block <= target that divides `dim` and is a multiple of `multiple`.
    Falls back to the full dimension (always BlockSpec-legal) if none exists."""
    if dim <= target:
        return dim
    blk = (min(target, dim) // multiple) * multiple
    while blk >= multiple:
        if dim % blk == 0:
            return blk
        blk -= multiple
    return dim


def pooling(token_embedding, attention_mask, *, block_b=None, block_s=None):
    """token_embedding: [B, S, H] (any float dtype); attention_mask: [B, S].
    Returns [B, H] float32 (matches torch promotion via mask.float())."""
    B, S, H = token_embedding.shape
    itemsize = jnp.dtype(token_embedding.dtype).itemsize

    # `.float()` + unsqueeze, but kept lane-dense: [B, 1, S] with S on lanes.
    mask = attention_mask.astype(jnp.float32).reshape(B, 1, S)

    # Batch block: an outer dim for every operand, so any divisor of B works.
    tB = block_b if block_b is not None else (B if B <= 8 else _pick_block(B, 8, 1))
    # Sequence block: lane axis of the mask block -> multiple of 128 (or full S).
    # Budget ~8 MiB per emb buffer (double-buffered ~16 MiB), dtype-aware.
    if block_s is not None:
        tS = block_s
    else:
        target_ts = max(128, (8 * 1024 * 1024) // max(1, tB * H * itemsize))
        tS = _pick_block(S, target_ts, 128)
    assert B % tB == 0 and S % tS == 0, "block sizes must divide (B, S)"

    grid = (B // tB, S // tS)  # (parallel batch axis, reduction sequence axis)

    out = pl.pallas_call(
        pooling_kernel,
        out_shape=jax.ShapeDtypeStruct((B, 1, H), jnp.float32),
        grid_spec=pltpu.PrefetchScalarGridSpec(
            num_scalar_prefetch=0,
            grid=grid,
            in_specs=[
                pl.BlockSpec((tB, tS, H), lambda b, s: (b, s, 0)),   # embeddings
                pl.BlockSpec((tB, 1, tS), lambda b, s: (b, 0, s)),   # lane-dense mask
            ],
            out_specs=pl.BlockSpec((tB, 1, H), lambda b, s: (b, 0, 0)),
            scratch_shapes=[pltpu.VMEM((tB, 1, 1), jnp.float32)],
        ),
        compiler_params=pltpu.CompilerParams(
            dimension_semantics=("parallel", "arbitrary"),
            vmem_limit_bytes=32 * 1024 * 1024,
        ),
        cost_estimate=pl.CostEstimate(
            flops=2 * B * S * H,
            bytes_accessed=B * S * H * itemsize + B * S * 4 + B * H * 4,
            transcendentals=0,
        ),
    )(token_embedding, mask)

    return out.reshape(B, H)


def pooling_ref(token_embedding, attention_mask):
    """Pure-JAX reference mirroring the PyTorch forward."""
    mask = attention_mask[..., None].astype(jnp.float32)
    sum_emb = jnp.sum(token_embedding.astype(jnp.float32) * mask, axis=1)
    sum_mask = jnp.maximum(jnp.sum(mask, axis=1), -1e-9)  # clamp(min=-1e-9)
    return sum_emb / sum_mask


if __name__ == "__main__":
    key = jax.random.PRNGKey(0)
    k_emb, k_mask, k_emb2, k_mask2 = jax.random.split(key, 4)

    # Small, lane-friendly shapes (H is a multiple of 128; single-block path).
    B, S, H = 2, 8, 128
    token_embedding = jax.random.normal(k_emb, (B, S, H), dtype=jnp.float32)
    attention_mask = (jax.random.uniform(k_mask, (B, S)) > 0.3).astype(jnp.int32)
    attention_mask = attention_mask.at[:, 0].set(1)  # avoid all-padding rows (÷0)

    out = jax.block_until_ready(pooling(token_embedding, attention_mask))
    ref = pooling_ref(token_embedding, attention_mask)
    assert out.shape == (B, H)
    assert jnp.allclose(out, ref, atol=1e-5, rtol=1e-5), "mismatch (single-block path)"

    # Exercise the tiled / accumulating path (grid = (2, 2)).
    B2, S2, H2 = 4, 256, 128
    emb2 = jax.random.normal(k_emb2, (B2, S2, H2), dtype=jnp.float32)
    mask2 = (jax.random.uniform(k_mask2, (B2, S2)) > 0.4).astype(jnp.int32)
    mask2 = mask2.at[:, 0].set(1)
    out2 = jax.block_until_ready(pooling(emb2, mask2, block_b=2, block_s=128))
    ref2 = pooling_ref(emb2, mask2)
    assert out2.shape == (B2, H2)
    assert jnp.allclose(out2, ref2, atol=1e-4, rtol=1e-5), "mismatch (tiled path)"

    print("KERNEL_OK")
</pallas_src>

<mosaic_0001>
module attributes {stable_mosaic.version = 11 : i64} {
  func.func @pooling_kernel(%arg0: i32, %arg1: i32, %arg2: memref<2x8x128xf32, #tpu.memory_space<vmem>>, %arg3: memref<2x1x8xf32, #tpu.memory_space<vmem>>, %arg4: memref<2x1x128xf32, #tpu.memory_space<vmem>>, %arg5: memref<2x1x1xf32, #tpu.memory_space<vmem>>) attributes {dimension_semantics = [#tpu.dimension_semantics<parallel>, #tpu.dimension_semantics<arbitrary>], iteration_bounds = array<i64: 1, 1>, scalar_prefetch = 0 : i64, scratch_operands = 1 : i64, tpu.core_type = #tpu.core_type<tc>, window_params = [{transform_indices = @transform_0, window_bounds = array<i64: 2, 8, 128>}, {transform_indices = @transform_1, window_bounds = array<i64: 2, 1, 8>}, {transform_indices = @transform_2, window_bounds = array<i64: 2, 1, 128>}]} {
    %c0_i32 = arith.constant 0 : i32
    %0 = arith.cmpi eq, %arg1, %c0_i32 : i32
    %1 = arith.extui %0 : i1 to i32
    %c0_i32_0 = arith.constant 0 : i32
    %2 = arith.cmpi ne, %1, %c0_i32_0 : i32
    scf.if %2 {
      %cst_21 = arith.constant 0.000000e+00 : f32
      %17 = vector.broadcast %cst_21 : f32 to vector<2x1x128xf32>
      %c0_22 = arith.constant 0 : index
      %c0_23 = arith.constant 0 : index
      %c0_24 = arith.constant 0 : index
      %18 = vector.load %arg4[%c0_22, %c0_23, %c0_24] : memref<2x1x128xf32, #tpu.memory_space<vmem>>, vector<2x1x128xf32>
      tpu.vector_store %arg4[%c0_22, %c0_23, %c0_24], %17 {strides = array<i32>} : memref<2x1x128xf32, #tpu.memory_space<vmem>>, vector<2x1x128xf32>,
      %cst_25 = arith.constant 0.000000e+00 : f32
      %19 = vector.broadcast %cst_25 : f32 to vector<2x1x1xf32>
      %c0_26 = arith.constant 0 : index
      %c0_27 = arith.constant 0 : index
      %c0_28 = arith.constant 0 : index
      %20 = vector.load %arg5[%c0_26, %c0_27, %c0_28] : memref<2x1x1xf32, #tpu.memory_space<vmem>>, vector<2x1x1xf32>
      tpu.vector_store %arg5[%c0_26, %c0_27, %c0_28], %19 {strides = array<i32>} : memref<2x1x1xf32, #tpu.memory_space<vmem>>, vector<2x1x1xf32>,
    } else {
    }
    %c0 = arith.constant 0 : index
    %c0_1 = arith.constant 0 : index
    %c0_2 = arith.constant 0 : index
    %3 = vector.load %arg3[%c0, %c0_1, %c0_2] : memref<2x1x8xf32, #tpu.memory_space<vmem>>, vector<2x1x8xf32>
    %c0_3 = arith.constant 0 : index
    %c0_4 = arith.constant 0 : index
    %c0_5 = arith.constant 0 : index
    %4 = vector.load %arg2[%c0_3, %c0_4, %c0_5] : memref<2x8x128xf32, #tpu.memory_space<vmem>>, vector<2x8x128xf32>
    %c0_6 = arith.constant 0 : index
    %c0_7 = arith.constant 0 : index
    %c0_8 = arith.constant 0 : index
    %5 = vector.load %arg4[%c0_6, %c0_7, %c0_8] : memref<2x1x128xf32, #tpu.memory_space<vmem>>, vector<2x1x128xf32>
    %cst = arith.constant dense<0.000000e+00> : vector<2x1x128xf32>
    %6 = tpu.matmul %3, %4, %cst {dimension_numbers = #tpu.dot_dimension_numbers<[2], [1], [1], [2], [0, 0, 0, 1, 1, 2], [0], [0]>} : vector<2x1x8xf32>, vector<2x8x128xf32>, vector<2x1x128xf32> -> vector<2x1x128xf32>
    %7 = arith.addf %5, %6 : vector<2x1x128xf32>
    %c0_9 = arith.constant 0 : index
    %c0_10 = arith.constant 0 : index
    %c0_11 = arith.constant 0 : index
    %8 = vector.load %arg4[%c0_9, %c0_10, %c0_11] : memref<2x1x128xf32, #tpu.memory_space<vmem>>, vector<2x1x128xf32>
    tpu.vector_store %arg4[%c0_9, %c0_10, %c0_11], %7 {strides = array<i32>} : memref<2x1x128xf32, #tpu.memory_space<vmem>>, vector<2x1x128xf32>,
    %c0_12 = arith.constant 0 : index
    %c0_13 = arith.constant 0 : index
    %c0_14 = arith.constant 0 : index
    %9 = vector.load %arg5[%c0_12, %c0_13, %c0_14] : memref<2x1x1xf32, #tpu.memory_space<vmem>>, vector<2x1x1xf32>
    %cst_15 = arith.constant dense<0.000000e+00> : vector<2x1xf32>
    %10 = vector.multi_reduction <add>, %3, %cst_15 [2] : vector<2x1x8xf32> to vector<2x1xf32>
    %11 = vector.shape_cast %10 : vector<2x1xf32> to vector<2x1x1xf32>
    %12 = arith.addf %9, %11 : vector<2x1x1xf32>
    %c0_16 = arith.constant 0 : index
    %c0_17 = arith.constant 0 : index
    %c0_18 = arith.constant 0 : index
    %13 = vector.load %arg5[%c0_16, %c0_17, %c0_18] : memref<2x1x1xf32, #tpu.memory_space<vmem>>, vector<2x1x1xf32>
    tpu.vector_store %arg5[%c0_16, %c0_17, %c0_18], %12 {strides = array<i32>} : memref<2x1x1xf32, #tpu.memory_space<vmem>>, vector<2x1x1xf32>,
    %c0_i32_19 = arith.constant 0 : i32
    %14 = arith.cmpi eq, %arg1, %c0_i32_19 : i32
    %15 = arith.extui %14 : i1 to i32
    %c0_i32_20 = arith.constant 0 : i32
    %16 = arith.cmpi ne, %15, %c0_i32_20 : i32
    scf.if %16 {
      %c0_21 = arith.constant 0 : index
      %c0_22 = arith.constant 0 : index
      %c0_23 = arith.constant 0 : index
      %17 = vector.load %arg5[%c0_21, %c0_22, %c0_23] : memref<2x1x1xf32, #tpu.memory_space<vmem>>, vector<2x1x1xf32>
      %cst_24 = arith.constant -9.99999971E-10 : f32
      %18 = vector.broadcast %cst_24 : f32 to vector<2x1x1xf32>
      %19 = arith.maximumf %17, %18 : vector<2x1x1xf32>
      %c0_25 = arith.constant 0 : index
      %c0_26 = arith.constant 0 : index
      %c0_27 = arith.constant 0 : index
      %20 = vector.load %arg4[%c0_25, %c0_26, %c0_27] : memref<2x1x128xf32, #tpu.memory_space<vmem>>, vector<2x1x128xf32>
      %21 = tpu.reciprocal %19 : vector<2x1x1xf32> -> vector<2x1x1xf32>
      %22 = vector.broadcast %21 : vector<2x1x1xf32> to vector<2x1x128xf32>
      %23 = arith.mulf %20, %22 : vector<2x1x128xf32>
      %c0_28 = arith.constant 0 : index
      %c0_29 = arith.constant 0 : index
      %c0_30 = arith.constant 0 : index
      %24 = vector.load %arg4[%c0_28, %c0_29, %c0_30] : memref<2x1x128xf32, #tpu.memory_space<vmem>>, vector<2x1x128xf32>
      tpu.vector_store %arg4[%c0_28, %c0_29, %c0_30], %23 {strides = array<i32>} : memref<2x1x128xf32, #tpu.memory_space<vmem>>, vector<2x1x128xf32>,
    } else {
    }
    return
  }
  func.func @transform_0(%arg0: i32, %arg1: i32) -> (i32, i32, i32) {
    %c0_i32 = arith.constant 0 : i32
    %c0_i32_0 = arith.constant 0 : i32
    return %arg0, %arg1, %c0_i32 : i32, i32, i32
  }
  func.func @transform_1(%arg0: i32, %arg1: i32) -> (i32, i32, i32) {
    %c0_i32 = arith.constant 0 : i32
    %c0_i32_0 = arith.constant 0 : i32
    return %arg0, %c0_i32, %arg1 : i32, i32, i32
  }
  func.func @transform_2(%arg0: i32, %arg1: i32) -> (i32, i32, i32) {
    %c0_i32 = arith.constant 0 : i32
    %c0_i32_0 = arith.constant 0 : i32
    %c0_i32_1 = arith.constant 0 : i32
    return %arg0, %c0_i32, %c0_i32_0 : i32, i32, i32
  }
}

</mosaic_0001>

<bundles_post_ra>
// kernel: tpu_custom_call.1
= control target key start
LH: loop header
LB: loop body
LE: loop exit
PB: predicated region body
PF: predicated region fallthrough
CT: control target
= control target key end

     0   :  { %7 = vsyncpa [#allocation4], 0  ;;  %s393_s0 = inlined_call_operand.hbm [shape: f32[2,8,128], index: 0, kind: input, shape index: {}]   ;;  %s394_s1 = inlined_call_operand.vmem [shape: f32[2,1,8], index: 1, kind: input, shape index: {}]   ;;  %s395_s2 = inlined_call_operand.hbm [shape: f32[2,1,128], index: 2, kind: output, shape index: {}]  }
   0x1   :  { %8 = vsyncpa [#allocation5], 0  ;;  %s335_s9 = smov [#allocation3]   ;;  %s287_s13 = scalar_lea.hbm %s393_s0, 256 }
   0x2   :  { %s14_s10 = sshll.u32 %s335_s9, 4  ;;  %p288_p0 = scmp.ne.s32.totalorder %s393_s0, %s287_s13  ;;  %s15_s10 = int_to_ptr.vmem [resolvable:$true] %s14_s10 }
   0x3   :  { %p291_p1 = scmp.lt.u32.totalorder %s287_s13, %s393_s0 }
   0x5   :  { %p293_p2 = pnand %p291_p1, %p288_p0 }
   0x7   :  { %296 = shalt.err (!%p293_p2)
}
   0x8   :  { %s297_s18 = scalar_lea.vmem %s15_s10, 256  ;;  %p302_p4 = scmp.lt.s32.totalorder %s15_s10, %s15_s10 }
   0x9   :  { %p298_p3 = scmp.ne.s32.totalorder %s15_s10, %s297_s18  ;;  %p303_p5 = scmp.lt.s32.totalorder %s297_s18, %s297_s18 }
   0xb   :  { %p304_p6 = por %p303_p5, %p302_p4 }
   0xd   :  { %p305_p7 = pnand %p304_p6, %p298_p3 }
   0xf   :  { %308 = shalt.err (!%p305_p7)
}
  0x10   :  { %s336_s19 = smov 128   ;;  %s337_s20 = smov 8  }
  0x11   :  { %20 = dma.hbm_to_vmem [thread:$0]  %s393_s0, 256, %s15_s10, [#allocation4], %s336_s19, %s336_s19, %s337_s20  }
  0x12   :  { %331 = dma.done.wait [#allocation4], 256  }
  0x13   :  { %332 = vsyncadd [#allocation4], 4294967040  ;;  %v338_v0 = vmov 0.0   ;;  %vm339_vm0 = vmmov 0   ;;  %vm32_vm1 = vcmask 0   ;;  %vm194_vm2 = vcmask 57344  }
  0x14   :  { %262 = vmatprep.subr.mxu0 %v338_v0  ;;  %30 = vst [vmem:[#allocation6] sm:$0x1] %v338_v0  ;;  %31 = vst [vmem:[#allocation6 + $0x1] sm:$0x1] %v338_v0  ;;  %264 = vmatprep.mubr.msk.f32.mxu0 %vm339_vm0, %v338_v0  ;;  %vm41_vm3 = vcmask 64512   ;;  %v37_v3 = vld [vmem:[#allocation3] sm:$0xff]  ;;  %v222_v28 = vlaneseq }
  0x15   :  { %267 = vmatprep.subr.mxu1 %v338_v0  ;;  %269 = vmatprep.mubr.msk.f32.mxu1 %vm339_vm0, %v338_v0  ;;  %33 = vst.msk [vmem:[#allocation2] sm:$0x1] %vm32_vm1, %v338_v0  ;;  %34 = vst.msk [vmem:[#allocation2 + $0x1] sm:$0x1] %vm32_vm1, %v338_v0  ;;  %v35_v1 = vld [vmem:[%s394_s1] sm:$0x1] }
  0x16   :  { %v36_v2 = vld [vmem:[%s394_s1 + $0x1] sm:$0x1]  ;;  %v195_v4 = vsel %vm194_vm2, %v35_v1, 0.0  ;;  %263 = vmatpush3.msra.mxu0 %v37_v3  ;;  %v38_v5 = vld [vmem:[#allocation3 + $0x8] sm:$0xff]  ;;  %v340_v7 = vmov 0   ;;  %v223_v29 = vshrl.u32 %v222_v28, 7 }
  0x17   :  { %196 = vadd.xlane.f32.xlu0 %v195_v4  ;;  %265 = vmatmul.mubr.msk.f32.vlgmr.msra.gmra.mrb[0].mxu0 %vm41_vm3, %v35_v1  ;;  %v198_v6 = vsel %vm194_vm2, %v36_v2, 0.0  ;;  %s341_s1 = smov [#allocation6]  }
  0x18   :  { %268 = vmatpush3.msra.mxu1 %v38_v5  ;;  %281 = vset.pattern.permute.xlu1 %v340_v7  ;;  %v224_v30 = vsub.s32 0, %v223_v29  ;;  %s244_s26 = sshll.u32 %s341_s1, 4  ;;  %s245_s26 = int_to_ptr.vmem [resolvable:$true] %s244_s26 }
  0x19   :  { %270 = vmatmul.mubr.msk.f32.vlgmr.msra.gmra.mrb[0].mxu1 %vm41_vm3, %v36_v2  ;;  %282 = vset.pattern.permute.xlu0 %v340_v7  ;;  %s309_s27 = scalar_lea.vmem %s245_s26, 32  ;;  %p314_p9 = scmp.lt.s32.totalorder %s245_s26, %s245_s26 }
  0x1a   :  { %p310_p8 = scmp.ne.s32.totalorder %s245_s26, %s309_s27  ;;  %p315_p10 = scmp.lt.s32.totalorder %s309_s27, %s309_s27 }
  0x1b   :  { %199 = vadd.xlane.f32.xlu0 %v198_v6  ;;  %v39_v20 = vld [vmem:[#allocation6] sm:$0x1]  ;;  %v40_v22 = vld [vmem:[#allocation6 + $0x1] sm:$0x1] }
  0x1c   :  { %v192_v8 = vld [vmem:[#allocation2] sm:$0x1]  ;;  %v193_v11 = vld [vmem:[#allocation2 + $0x1] sm:$0x1]  ;;  %p316_p11 = por %p315_p10, %p314_p9 }
  0x1e   :  { %p317_p12 = pnand %p316_p11, %p310_p8 }
  0xa4   :  { %v197_v9 = vpop.xlane.xlu0 %196 }
  0xa5   :  { %v201_v10 = vadd.f32 %v197_v9, %v192_v8 }
  0xa7   :  { %204 = vst.msk [vmem:[#allocation2] sm:$0x1] %vm32_vm1, %v201_v10 }
  0xa8   :  { %v200_v12 = vpop.xlane.xlu0 %199 }
  0xa9   :  { %v202_v13 = vadd.f32 %v200_v12, %v193_v11 }
  0xab   :  { %205 = vst.msk [vmem:[#allocation2 + $0x1] sm:$0x1] %vm32_vm1, %v202_v13 }
  0xae   :  { %v209_v14 = vld [vmem:[#allocation2] sm:$0x1] }
  0xaf   :  { %v211_v15 = vmax.f32 %v209_v14, -1e-09 }
  0xb1   :  { %283 = vrcp.f32 %v211_v15 }
  0xb2   :  { %v210_v16 = vld [vmem:[#allocation2 + $0x1] sm:$0x1] }
  0xb3   :  { %v212_v17 = vmax.f32 %v210_v16, -1e-09 }
  0xb5   :  { %285 = vrcp.f32 %v212_v17 }
  0xbb   :  { %v284_v18 = vpop.eup %283 }
  0xbc   :  { %219 = vperm.xlu1 %281, %v284_v18  }
  0xbf   :  { %v286_v19 = vpop.eup %285 }
  0xc0   :  { %228 = vperm.xlu1 %281, %v286_v19  }
  0xea   :  { %v111_v21 = vpop.f32.mrb[0].mxu0 }
  0xeb   :  { %v188_v23 = vadd.f32 %v111_v21, %v39_v20  ;;  %v266_v24 = vpop.f32.mrb[1].mxu0 }
  0xec   :  { %v184_v25 = vpop.f32.mrb[0].mxu1 }
  0xed   :  { %190 = vst [vmem:[#allocation6] sm:$0x1] %v188_v23  ;;  %v189_v26 = vadd.f32 %v184_v25, %v40_v22  ;;  %v271_v27 = vpop.f32.mrb[1].mxu1 }
  0xef   :  { %191 = vst [vmem:[#allocation6 + $0x1] sm:$0x1] %v189_v26 }
  0xf4   :  { %v213_v32 = vld [vmem:[#allocation6] sm:$0x1] }
  0xf6   :  { %v214_v36 = vld [vmem:[#allocation6 + $0x1] sm:$0x1] }
 0x13b   :  { %v220_v31 = vpop.permute.xlu1 %219 }
 0x13c   :  { %v225_v33 = vrot.slane %v220_v31, %v224_v30 }
 0x13e   :  { %v235_v34 = vmul.f32 %v225_v33, %v213_v32 }
 0x13f   :  { %v229_v35 = vpop.permute.xlu1 %228 }
 0x140   :  { %237 = vst [vmem:[#allocation6] sm:$0x1] %v235_v34  ;;  %v234_v37 = vrot.slane %v229_v35, %v224_v30 }
 0x142   :  { %v236_v38 = vmul.f32 %v234_v37, %v214_v36 }
 0x144   :  { %238 = vst [vmem:[#allocation6 + $0x1] sm:$0x1] %v236_v38 }
 0x145   :  { %320 = shalt.err (!%p317_p12)
}
 0x146   :  { %s321_s30 = scalar_lea.hbm %s395_s2, 32 }
 0x147   :  { %p322_p13 = scmp.ne.s32.totalorder %s395_s2, %s321_s30  ;;  %p325_p0 = scmp.lt.u32.totalorder %s321_s30, %s395_s2 }
 0x149   :  { %p327_p1 = pnand %p325_p0, %p322_p13 }
 0x14b   :  { %330 = shalt.err (!%p327_p1)
}
 0x14c   :  { %s342_s7 = smov 16   ;;  %s343_s8 = smov 1  }
 0x14d   :  { %250 = dma.vmem_to_hbm [thread:$0]  %s245_s26, 32, %s395_s2, [#allocation5], %s342_s7, %s342_s7, %s343_s8  }
 0x14e   :  { %333 = dma.done.wait [#allocation5], 32  }
 0x14f   :  { %334 = vsyncadd [#allocation5], 4294967264 }
 0x150   :  { %254 = vsyncpa [#allocation4], 1 }
 0x151   :  { %255 = vsyncpa [#allocation5], 1 }

</bundles_post_ra>
